<compile_context>
chip_gen: v7x
topology: tpu7x:2x2x1
jax: 0.10.0
libtpu: 0.0.40
codegen_flags: <defaults>
</compile_context>

<pallas_src>
import math
import functools

import jax
import jax.numpy as jnp
from jax.experimental import pallas as pl
from jax.experimental.pallas import tpu as pltpu


def make_sinusoidal_pe(d_model: int, max_len: int = 10000, dtype=jnp.float32):
    """Deterministic positional-encoding buffer (matches torch __init__)."""
    position = jnp.arange(0, max_len, dtype=jnp.float32)[:, None]              # (L, 1)
    div_term = jnp.exp(
        jnp.arange(0, d_model, 2, dtype=jnp.float32) * (-math.log(10000.0) / d_model)
    )                                                                           # (ceil(D/2),)
    pe = jnp.zeros((max_len, d_model), dtype=jnp.float32)
    pe = pe.at[:, 0::2].set(jnp.sin(position * div_term))
    # Slice div_term for the cos branch so odd d_model doesn't shape-mismatch.
    pe = pe.at[:, 1::2].set(jnp.cos(position * div_term[: d_model // 2]))
    return pe.astype(dtype)


def _pe_add_kernel(x_ref, pe_ref, o_ref):
    # x_ref: (1, TR, C), pe_ref: (TR, C) — broadcast add; pe cast in-kernel
    # (matches the PyTorch `.to(x.dtype)` before the add).
    o_ref[...] = x_ref[...] + pe_ref[...].astype(o_ref.dtype)


# Tile/VMEM budget: ~6 MiB x tile; worst-case 6 tiles live (x, pe, out, each
# double-buffered) ≈ 36 MiB < 48 MiB limit < v7x's 64 MiB physical VMEM.
_TARGET_TILE_BYTES = 6 * 1024 * 1024
_VMEM_LIMIT_BYTES = 48 * 1024 * 1024


def _choose_row_tile(num_rows: int, row_bytes: int, itemsize: int, min_tiles: int) -> int:
    """Rows per tile: sized by bytes, sublane-pack aligned, even split preferred."""
    pack = max(8, 32 // max(itemsize, 1))          # rows per vreg: f32=8, bf16=16, i8/fp8=32
    target_rows = max(pack, _TARGET_TILE_BYTES // max(row_bytes, 1))
    if target_rows >= num_rows and min_tiles <= 1:
        return num_rows                            # single full-extent tile (always legal)
    # Pick the tile count first, then split R as evenly as possible (pack-aligned).
    num_r = max(min_tiles, pl.cdiv(num_rows, target_rows))
    tr = pl.cdiv(num_rows, num_r)
    tr = ((tr + pack - 1) // pack) * pack
    return min(tr, num_rows)


@functools.partial(jax.jit, donate_argnums=0)
def sinusoidal_positional_encoding(x: jax.Array, pe: jax.Array) -> jax.Array:
    """x: (B, S, D); pe: (max_len, D). Returns x + pe[:S] broadcast over batch."""
    B, S, D = x.shape
    max_len = pe.shape[0]
    assert S <= max_len, f"seq_len {S} exceeds positional-encoding max_len {max_len}"

    # Keep pe in its stored dtype; the (cheap, once-per-row-tile) cast happens in-kernel.
    pe_slice = pe[:S]  # (S, D)

    # Lane-dense fold of the (S, D) plane when the feature dim is narrow.
    if D % 128 != 0 and (S * D) % 128 == 0:
        C = 128
        R = (S * D) // C
    else:
        C = D
        R = S
    x2 = x.reshape(B, R, C)
    pe2 = pe_slice.reshape(R, C)

    itemsize = x.dtype.itemsize
    row_bytes = C * itemsize
    # v7x megacore: make sure the grid exposes >= 2 parallel steps.
    min_tiles = 1 if B >= 2 else 2
    TR = _choose_row_tile(R, row_bytes, itemsize, min_tiles)
    num_r = pl.cdiv(R, TR)

    out2 = pl.pallas_call(
        _pe_add_kernel,
        out_shape=jax.ShapeDtypeStruct((B, R, C), x.dtype),
        grid_spec=pltpu.PrefetchScalarGridSpec(
            num_scalar_prefetch=0,
            # B innermost: pe's block index is constant across it, so Pallas
            # skips the redundant pe DMA (one fetch per row tile).
            grid=(num_r, B),
            in_specs=[
                pl.BlockSpec((1, TR, C), lambda r, b: (b, r, 0)),
                pl.BlockSpec((TR, C), lambda r, b: (r, 0)),
            ],
            out_specs=pl.BlockSpec((1, TR, C), lambda r, b: (b, r, 0)),
        ),
        compiler_params=pltpu.CompilerParams(
            dimension_semantics=("parallel", "parallel"),
            vmem_limit_bytes=_VMEM_LIMIT_BYTES,
        ),
        # In-place on x's HBM buffer; real (not defensive-copied) because the
        # jit boundary donates x.
        input_output_aliases={0: 0},
    )(x2, pe2)

    return out2.reshape(B, S, D)


if __name__ == "__main__":
    # Small, deterministic example consistent with the module's forward:
    # (batch_size, seq_len, d_model) = (2, 8, 32)
    B, S, D = 2, 8, 32
    MAX_LEN = 64  # keep the buffer small for the demo; semantics identical

    key = jax.random.PRNGKey(0)
    x = jax.random.normal(key, (B, S, D), dtype=jnp.float32)

    pe = make_sinusoidal_pe(D, max_len=MAX_LEN, dtype=jnp.float32)

    # Reference (pure JAX, mirrors the PyTorch forward) computed BEFORE the
    # kernel call: x is donated to the jitted wrapper and invalidated after it.
    ref = x + pe[:S][None, :, :].astype(x.dtype)
    ref = jax.block_until_ready(ref)

    out = sinusoidal_positional_encoding(x, pe)
    out = jax.block_until_ready(out)

    assert out.shape == (B, S, D)
    assert jnp.allclose(out, ref, atol=1e-6, rtol=1e-6), "mismatch vs reference"

    print("KERNEL_OK")
</pallas_src>

<mosaic_0001>
module attributes {stable_mosaic.version = 11 : i64} {
  func.func @_pe_add_kernel(%arg0: i32, %arg1: i32, %arg2: memref<1x2x128xf32, #tpu.memory_space<vmem>>, %arg3: memref<2x128xf32, #tpu.memory_space<vmem>>, %arg4: memref<1x2x128xf32, #tpu.memory_space<vmem>>) attributes {dimension_semantics = [#tpu.dimension_semantics<parallel>, #tpu.dimension_semantics<parallel>], iteration_bounds = array<i64: 1, 2>, scalar_prefetch = 0 : i64, scratch_operands = 0 : i64, tpu.core_type = #tpu.core_type<tc>, window_params = [{transform_indices = @transform_0, window_bounds = array<i64: 1, 2, 128>}, {transform_indices = @transform_1, window_bounds = array<i64: 2, 128>}, {transform_indices = @transform_2, window_bounds = array<i64: 1, 2, 128>}]} {
    %c0 = arith.constant 0 : index
    %c0_0 = arith.constant 0 : index
    %c0_1 = arith.constant 0 : index
    %0 = vector.load %arg2[%c0, %c0_0, %c0_1] : memref<1x2x128xf32, #tpu.memory_space<vmem>>, vector<1x2x128xf32>
    %c0_2 = arith.constant 0 : index
    %c0_3 = arith.constant 0 : index
    %1 = vector.load %arg3[%c0_2, %c0_3] : memref<2x128xf32, #tpu.memory_space<vmem>>, vector<2x128xf32>
    %2 = vector.shape_cast %1 : vector<2x128xf32> to vector<1x2x128xf32>
    %3 = arith.addf %0, %2 : vector<1x2x128xf32>
    %c0_4 = arith.constant 0 : index
    %c0_5 = arith.constant 0 : index
    %c0_6 = arith.constant 0 : index
    %4 = vector.load %arg4[%c0_4, %c0_5, %c0_6] : memref<1x2x128xf32, #tpu.memory_space<vmem>>, vector<1x2x128xf32>
    tpu.vector_store %arg4[%c0_4, %c0_5, %c0_6], %3 {strides = array<i32>} : memref<1x2x128xf32, #tpu.memory_space<vmem>>, vector<1x2x128xf32>,
    return
  }
  func.func @transform_0(%arg0: i32, %arg1: i32) -> (i32, i32, i32) {
    %c0_i32 = arith.constant 0 : i32
    %c0_i32_0 = arith.constant 0 : i32
    return %arg1, %arg0, %c0_i32 : i32, i32, i32
  }
  func.func @transform_1(%arg0: i32, %arg1: i32) -> (i32, i32) {
    %c0_i32 = arith.constant 0 : i32
    %c0_i32_0 = arith.constant 0 : i32
    return %arg0, %c0_i32 : i32, i32
  }
  func.func @transform_2(%arg0: i32, %arg1: i32) -> (i32, i32, i32) {
    %c0_i32 = arith.constant 0 : i32
    %c0_i32_0 = arith.constant 0 : i32
    return %arg1, %arg0, %c0_i32 : i32, i32, i32
  }
}

</mosaic_0001>

<bundles_post_ra>
// kernel: sinusoidal_positional_encoding.1
= control target key start
LH: loop header
LB: loop body
LE: loop exit
PB: predicated region body
PF: predicated region fallthrough
CT: control target
= control target key end

     0   :  { %s354_s9 = smov 0   ;;  %s331_s10 = smov 0   ;;  %s368_s0 = inlined_call_operand.vmem [shape: f32[2,2,128], index: 0, kind: input, shape index: {}, may-alias: {0,2}]   ;;  %s369_s1 = inlined_call_operand.vmem [shape: f32[2,128], index: 1, kind: input, shape index: {}]   ;;  %s370_s2 = inlined_call_operand.vmem [shape: f32[2,2,128], index: 2, kind: output, shape index: {}, may-alias: {0,2}]  }
   0x1   :  { %s335_s11 = smov 0  }
   0x2 LB: > { %s21_s12 = sadd.s32 1, %s333_s10  ;;  %p286_p0 = scmp.ge.s32.totalorder %s337_s11, 1  ;;  %s337_s11 = sphi %s335_s11, %s12_s11   ;;  %s333_s10 = sphi %s331_s10, %s332_s10   ;;  %s329_s9 = sphi %s354_s9, %s371_s9  }
   0x3   : > { %p22_p1 = scmp.ge.s32.totalorder %s21_s12, 2  ;;  %p139_p2 = scmp.lt.s32.totalorder %s337_s11, 3 }
   0x5   : > { %s373_s12 = smov (%p22_p1, %s21_s12), 0  ;;  %p140_p3 = pnand %p286_p0, %p139_p2 }
   0x6   : > { %p169_p4 = scmp.lt.s32.totalorder (!%p140_p3), %s329_s9, 1  ;;  %v188_v0 = vld [vmem:[%s369_s1] sm:$0x3] (!%p140_p3) }
   0x7   : > { %143 = sbr.rel (%p140_p3) target bundleno = 21 (0x15), region = 28 }
   0xe   : > { %s375_s9 = smov (!%p169_p4, %s329_s9), 1 }
   0xf   : > { %s287_s13 = sshll.u32 %s375_s9, 1 }
  0x10   : > { %s175_s18 = scalar_lea.vmem %s368_s0, %s287_s13  ;;  %s186_s21 = scalar_lea.vmem %s370_s2, %s287_s13 }
  0x11   : > { %v187_v1 = vld [vmem:[%s175_s18] sm:$0x3] }
  0x12   : > { %v189_v2 = vadd.f32 %v188_v0, %v187_v1 }
  0x14   : > { %190 = vst [vmem:[%s186_s21] sm:$0x3] %v189_v2 }
  0x15 PF: > { %s12_s11 = sadd.s32 1, %s337_s11   ;;  %s371_s9 = smov %s333_s10 }
  0x16   : > { %p9_p5 = scmp.ge.s32.totalorder %s12_s11, 4   ;;  %s332_s10 = smov %s373_s12  }
  0x18   :  { %11 = sbr.rel (!%p9_p5) target bundleno = 2 (0x2), region = 61 }

</bundles_post_ra>
